<compile_context>
chip_gen: v6e
topology: v6e:2x2x1
jax: 0.10.0
libtpu: 0.0.40
codegen_flags: <defaults>
</compile_context>

<pallas_src>
import jax
import jax.numpy as jnp
import numpy as np
from jax import lax
from jax.experimental import pallas as pl
from jax.experimental.pallas import tpu as pltpu


def _round_up(a, b):
    return ((a + b - 1) // b) * b


def _vmem_limit_bytes():
    cap = 64 * 1024 * 1024
    try:
        cap = int(pltpu.get_tpu_info().vmem_capacity_bytes) or cap
    except Exception:
        pass
    # Half of physical, clamped to [32, 96] MiB  (v7x -> 32 MiB, v5e/v6e -> 64 MiB).
    return int(max(32 * 1024 * 1024, min(96 * 1024 * 1024, cap // 2)))


def _build_conv_matrices(weight, H, W, HWp):
    """Fold KxK weights AND zero padding into two (HWp, HWp) banded matrices:
    out = avg @ M_avg + max @ M_max  on the flattened (padded) spatial axis."""
    K = weight.shape[-1]
    P = K // 2
    HW = H * W
    w = np.asarray(jax.device_get(weight), np.float32).reshape(2, K, K)

    q = np.arange(HW)
    qr, qc = q // W, q % W
    m_avg = np.zeros((HWp, HWp), np.float32)
    m_max = np.zeros((HWp, HWp), np.float32)
    for ki in range(K):
        di = ki - P
        sr = qr + di
        for kj in range(K):
            dj = kj - P
            sc = qc + dj
            ok = (sr >= 0) & (sr < H) & (sc >= 0) & (sc < W)
            s = (sr * W + sc)[ok]
            m_avg[s, q[ok]] += w[0, ki, kj]
            m_max[s, q[ok]] += w[1, ki, kj]
    return jnp.asarray(m_avg), jnp.asarray(m_max)


def _build_tap_masks(H, W, HWp, K):
    """(K*K, HWp) float32 per-tap validity mask (folds zero padding and the
    flattened-spatial tail padding). Used by the roll fallback path."""
    P = K // 2
    HW = H * W
    q = np.arange(HWp)
    in_img = q < HW
    qr = np.where(in_img, q // W, 0)
    qc = np.where(in_img, q % W, 0)
    masks = np.zeros((K * K, HWp), np.float32)
    for ki in range(K):
        di = ki - P
        for kj in range(K):
            dj = kj - P
            ok = (in_img & (qr + di >= 0) & (qr + di < H)
                  & (qc + dj >= 0) & (qc + dj < W))
            masks[ki * K + kj] = ok.astype(np.float32)
    return jnp.asarray(masks)


def _make_kernel(*, NB, C, bc, HWp, K, W, multi_c, ragged, use_mxu, x_dtype):
    inv_c = 1.0 / C
    if jnp.issubdtype(x_dtype, jnp.floating):
        lowest = float(jnp.finfo(x_dtype).min)
    else:
        lowest = int(jnp.iinfo(x_dtype).min)

    def _partial_reduce(x_ref, c_start):
        xb = x_ref[...]                                      # (NB, bc, HWp) native dtype
        if ragged:
            ch = c_start + lax.broadcasted_iota(jnp.int32, (bc, HWp), 0)
            valid = (ch < C)[None, :, :]
            xs = jnp.where(valid, xb, 0)                     # pad sum with 0
            xm = jnp.where(valid, xb, lowest)                # pad max with -inf
        else:
            xs = xb
            xm = xb
        psum = jnp.sum(xs, axis=1, dtype=jnp.float32)        # (NB, HWp) f32
        pmax = jnp.max(xm, axis=1).astype(jnp.float32)       # (NB, HWp) f32
        return psum, pmax

    def _finalize_mxu(psum, pmax, m_avg_ref, m_max_ref, o_ref):
        avg = psum * inv_c
        y = jnp.dot(avg, m_avg_ref[...], preferred_element_type=jnp.float32)
        y = y + jnp.dot(pmax, m_max_ref[...], preferred_element_type=jnp.float32)
        o_ref[...] = jax.nn.sigmoid(y).astype(o_ref.dtype)

    def _finalize_roll(psum, pmax, w_ref, mask_ref, o_ref):
        P = K // 2
        maps = jnp.concatenate([psum * inv_c, pmax], axis=0)  # (2*NB, HWp)
        # Scalar weights hoisted out of the tap loop (SMEM reads).
        w_avg = [w_ref[t] for t in range(K * K)]
        w_max = [w_ref[K * K + t] for t in range(K * K)]
        acc = jnp.zeros((NB, HWp), jnp.float32)
        for ki in range(K):
            di = ki - P
            for kj in range(K):
                dj = kj - P
                t = ki * K + kj
                shift = (-(di * W + dj)) % HWp
                # ONE XLU roll for both maps (avg/max packed on sublanes);
                # precomputed float mask replaces all edge compares/selects.
                rolled = pltpu.roll(maps, shift=shift, axis=1)
                masked = rolled * mask_ref[t][None, :]
                acc = acc + w_avg[t] * masked[:NB] + w_max[t] * masked[NB:]
        o_ref[...] = jax.nn.sigmoid(acc).astype(o_ref.dtype)

    def _body(const_refs, x_ref, o_ref, scratch, finalize):
        if multi_c:
            sum_ref, max_ref = scratch
            c_idx = pl.program_id(1)
            psum, pmax = _partial_reduce(x_ref, c_idx * bc)

            @pl.when(c_idx == 0)
            def _():
                sum_ref[...] = psum
                max_ref[...] = pmax

            @pl.when(c_idx > 0)
            def _():
                sum_ref[...] = sum_ref[...] + psum
                max_ref[...] = jnp.maximum(max_ref[...], pmax)

            @pl.when(c_idx == pl.num_programs(1) - 1)
            def _():
                finalize(sum_ref[...], max_ref[...], *const_refs, o_ref)
        else:
            # grid_c == 1 fast path: no scratch, no predication.
            psum, pmax = _partial_reduce(x_ref, 0)
            finalize(psum, pmax, *const_refs, o_ref)

    if use_mxu:
        def kernel(m_avg_ref, m_max_ref, x_ref, o_ref, *scratch):
            _body((m_avg_ref, m_max_ref), x_ref, o_ref, scratch, _finalize_mxu)
    else:
        def kernel(w_ref, mask_ref, x_ref, o_ref, *scratch):
            _body((w_ref, mask_ref), x_ref, o_ref, scratch, _finalize_roll)
    return kernel


def spatial_attention_pallas(x, weight, kernel_size=7, *,
                             force_impl=None, max_block_channels=None):
    """x: (N, C, H, W), weight: (1, 2, K, K) -> (N, 1, H, W)."""
    N, C, H, W = x.shape
    K = kernel_size
    assert weight.shape == (1, 2, K, K), weight.shape
    HW = H * W
    HWp = _round_up(HW, 128)              # lane-dense flattened spatial axis
    itemsize = jnp.dtype(x.dtype).itemsize

    # ---- batch tile (sublane occupancy) ------------------------------------
    # NB is a multiple of 8 (dense sublanes, conforming blocks) when the batch
    # allows >=2 steps (both v7x TensorCores get work); otherwise whole batch.
    if N % 8 == 0 and N >= 16:
        NB = 8
    else:
        NB = N
    # TODO(synk): for N == 1 on v7x, add a second parallel split (spatial or a
    # core_map over the channel reduction) so both TensorCores are used.

    vmem_limit = _vmem_limit_bytes()

    # ---- conv implementation: MXU banded matrices vs packed-roll fallback ---
    mat_resident = 4 * HWp * HWp * 4      # 2 matrices x 2 pipeline buffers, f32
    if force_impl == "mxu":
        use_mxu = True
    elif force_impl == "roll":
        use_mxu = False
    else:
        use_mxu = mat_resident <= min(16 * 1024 * 1024, vmem_limit // 3)

    # ---- channel tiling (reduction axis) ------------------------------------
    mult = max(8, 32 // itemsize)         # f32: 8, bf16: 16, int8/fp8: 32
    fixed = (mat_resident if use_mxu else 2 * K * K * HWp * 4)
    fixed += 2 * NB * HWp * 4             # sum/max scratch
    fixed += 4 * NB * HWp * itemsize      # double-buffered output block
    x_budget = max(NB * mult * HWp * itemsize, (vmem_limit - fixed) // 3)
    max_bc = max(mult, x_budget // (NB * HWp * itemsize))
    if max_block_channels is not None:
        max_bc = min(max_bc, max(mult, int(max_block_channels)))
    max_bc = max(mult, (max_bc // mult) * mult)

    if C <= max_bc:
        bc, grid_c, ragged = C, 1, False
    else:
        bc = max_bc
        grid_c = -(-C // bc)
        ragged = (C % bc != 0)
    multi_c = grid_c > 1

    # ---- operands ------------------------------------------------------------
    x3 = x.reshape(N, C, HW)
    if HWp != HW:
        x3 = jnp.pad(x3, ((0, 0), (0, 0), (0, HWp - HW)))

    if use_mxu:
        const_inputs = _build_conv_matrices(weight, H, W, HWp)       # M_avg, M_max
    else:
        w_flat = jnp.asarray(weight, jnp.float32).reshape(-1)        # (2*K*K,) SMEM
        masks = _build_tap_masks(H, W, HWp, K)                        # (K*K, HWp)
        const_inputs = (w_flat, masks)

    # ---- grid & specs ---------------------------------------------------------
    if multi_c:
        grid = (N // NB, grid_c)
        dims = ("parallel", "arbitrary")
        x_index = lambda n, c: (n, c, 0)
        const_index = lambda n, c: (0, 0)
        out_index = lambda n, c: (n, 0)
        scratch = [pltpu.VMEM((NB, HWp), jnp.float32),
                   pltpu.VMEM((NB, HWp), jnp.float32)]
    else:
        grid = (N // NB,)
        dims = ("parallel",)
        x_index = lambda n: (n, 0, 0)
        const_index = lambda n: (0, 0)
        out_index = lambda n: (n, 0)
        scratch = []

    if use_mxu:
        const_specs = [pl.BlockSpec((HWp, HWp), const_index),
                       pl.BlockSpec((HWp, HWp), const_index)]
    else:
        const_specs = [pl.BlockSpec(memory_space=pltpu.MemorySpace.SMEM),
                       pl.BlockSpec((K * K, HWp), const_index)]

    kernel = _make_kernel(NB=NB, C=C, bc=bc, HWp=HWp, K=K, W=W,
                          multi_c=multi_c, ragged=ragged, use_mxu=use_mxu,
                          x_dtype=x.dtype)

    out2 = pl.pallas_call(
        kernel,
        out_shape=jax.ShapeDtypeStruct((N, HWp), x.dtype),
        grid=grid,
        in_specs=const_specs + [pl.BlockSpec((NB, bc, HWp), x_index)],
        out_specs=pl.BlockSpec((NB, HWp), out_index),
        scratch_shapes=scratch,
        compiler_params=pltpu.CompilerParams(
            dimension_semantics=dims,
            vmem_limit_bytes=vmem_limit),
    )(*const_inputs, x3)

    return out2[:, :HW].reshape(N, 1, H, W)


def spatial_attention_ref(x, weight):
    """Pure-JAX reference matching the PyTorch module."""
    avg = jnp.mean(x, axis=1, keepdims=True)
    mx = jnp.max(x, axis=1, keepdims=True)
    feat = jnp.concatenate([avg, mx], axis=1)
    pad = weight.shape[-1] // 2
    y = lax.conv_general_dilated(
        feat, weight, window_strides=(1, 1),
        padding=((pad, pad), (pad, pad)),
        dimension_numbers=("NCHW", "OIHW", "NCHW"),
        precision=lax.Precision.HIGHEST)
    return jax.nn.sigmoid(y)


if __name__ == "__main__":
    key = jax.random.PRNGKey(0)
    kx, kw = jax.random.split(key)
    K = 7
    weight = 0.1 * jax.random.normal(kw, (1, 2, K, K), dtype=jnp.float32)

    # 1) Primary small shapes: MXU path, single channel block, lane-dense 256.
    N, C, H, W = 2, 4, 16, 16
    x = jax.random.normal(kx, (N, C, H, W), dtype=jnp.float32)
    out = jax.block_until_ready(spatial_attention_pallas(x, weight, K))
    ref = jax.block_until_ready(spatial_attention_ref(x, weight))
    assert out.shape == (N, 1, H, W), out.shape
    np.testing.assert_allclose(np.asarray(out), np.asarray(ref),
                               rtol=2e-3, atol=2e-3)

    # 2) Packed-roll fallback: padded spatial (14*14 -> 256 lanes), NB=8 batch
    #    tile with two "parallel" batch steps.
    x2 = jax.random.normal(jax.random.PRNGKey(1), (16, 4, 14, 14), jnp.float32)
    out2 = jax.block_until_ready(
        spatial_attention_pallas(x2, weight, K, force_impl="roll"))
    ref2 = jax.block_until_ready(spatial_attention_ref(x2, weight))
    np.testing.assert_allclose(np.asarray(out2), np.asarray(ref2),
                               rtol=1e-4, atol=1e-4)

    # 3) Multi-block ragged channel reduction (C=13 with 8-channel blocks),
    #    exercising the "arbitrary" axis, scratch accumulators and masking.
    x3 = jax.random.normal(jax.random.PRNGKey(2), (2, 13, 8, 8), jnp.float32)
    out3 = jax.block_until_ready(
        spatial_attention_pallas(x3, weight, K, max_block_channels=8))
    ref3 = jax.block_until_ready(spatial_attention_ref(x3, weight))
    np.testing.assert_allclose(np.asarray(out3), np.asarray(ref3),
                               rtol=2e-3, atol=2e-3)

    print("KERNEL_OK")
</pallas_src>

<mosaic_0001>
module attributes {stable_mosaic.version = 11 : i64} {
  func.func @kernel(%arg0: i32, %arg1: memref<256x256xf32, #tpu.memory_space<vmem>>, %arg2: memref<256x256xf32, #tpu.memory_space<vmem>>, %arg3: memref<2x4x256xf32, #tpu.memory_space<vmem>>, %arg4: memref<2x256xf32, #tpu.memory_space<vmem>>) attributes {dimension_semantics = [#tpu.dimension_semantics<parallel>], iteration_bounds = array<i64: 1>, scalar_prefetch = 0 : i64, scratch_operands = 0 : i64, tpu.core_type = #tpu.core_type<tc>, window_params = [{pipeline_mode = #tpu.pipeline_mode<synchronous>, transform_indices = @transform_0, window_bounds = array<i64: 256, 256>}, {pipeline_mode = #tpu.pipeline_mode<synchronous>, transform_indices = @transform_1, window_bounds = array<i64: 256, 256>}, {transform_indices = @transform_2, window_bounds = array<i64: 2, 4, 256>}, {transform_indices = @transform_3, window_bounds = array<i64: 2, 256>}]} {
    %c0 = arith.constant 0 : index
    %c0_0 = arith.constant 0 : index
    %c0_1 = arith.constant 0 : index
    %0 = vector.load %arg3[%c0, %c0_0, %c0_1] : memref<2x4x256xf32, #tpu.memory_space<vmem>>, vector<2x4x256xf32>
    %cst = arith.constant dense<0.000000e+00> : vector<2x256xf32>
    %1 = vector.multi_reduction <add>, %0, %cst [1] : vector<2x4x256xf32> to vector<2x256xf32>
    %cst_2 = arith.constant dense<0xFF800000> : vector<2x256xf32>
    %2 = vector.multi_reduction <maximumf>, %0, %cst_2 [1] : vector<2x4x256xf32> to vector<2x256xf32>
    %cst_3 = arith.constant 2.500000e-01 : f32
    %3 = vector.broadcast %cst_3 : f32 to vector<2x256xf32>
    %4 = arith.mulf %1, %3 : vector<2x256xf32>
    %c0_4 = arith.constant 0 : index
    %c0_5 = arith.constant 0 : index
    %5 = vector.load %arg1[%c0_4, %c0_5] : memref<256x256xf32, #tpu.memory_space<vmem>>, vector<256x256xf32>
    %cst_6 = arith.constant dense<0.000000e+00> : vector<2x256xf32>
    %6 = tpu.matmul %4, %5, %cst_6 {dimension_numbers = #tpu.dot_dimension_numbers<[1], [0], [0], [1], [0, 0, 1, 1], [], []>} : vector<2x256xf32>, vector<256x256xf32>, vector<2x256xf32> -> vector<2x256xf32>
    %c0_7 = arith.constant 0 : index
    %c0_8 = arith.constant 0 : index
    %7 = vector.load %arg2[%c0_7, %c0_8] : memref<256x256xf32, #tpu.memory_space<vmem>>, vector<256x256xf32>
    %cst_9 = arith.constant dense<0.000000e+00> : vector<2x256xf32>
    %8 = tpu.matmul %2, %7, %cst_9 {dimension_numbers = #tpu.dot_dimension_numbers<[1], [0], [0], [1], [0, 0, 1, 1], [], []>} : vector<2x256xf32>, vector<256x256xf32>, vector<2x256xf32> -> vector<2x256xf32>
    %9 = arith.addf %6, %8 : vector<2x256xf32>
    %10 = arith.negf %9 : vector<2x256xf32>
    %11 = math.exp %10 : vector<2x256xf32>
    %cst_10 = arith.constant 1.000000e+00 : f32
    %12 = vector.broadcast %cst_10 : f32 to vector<2x256xf32>
    %13 = arith.addf %12, %11 : vector<2x256xf32>
    %14 = arith.divf %12, %13 : vector<2x256xf32>
    %c0_11 = arith.constant 0 : index
    %c0_12 = arith.constant 0 : index
    %15 = vector.load %arg4[%c0_11, %c0_12] : memref<2x256xf32, #tpu.memory_space<vmem>>, vector<2x256xf32>
    tpu.vector_store %arg4[%c0_11, %c0_12], %14 {strides = array<i32>} : memref<2x256xf32, #tpu.memory_space<vmem>>, vector<2x256xf32>,
    return
  }
  func.func @transform_0(%arg0: i32) -> (i32, i32) {
    %c0_i32 = arith.constant 0 : i32
    %c0_i32_0 = arith.constant 0 : i32
    %c0_i32_1 = arith.constant 0 : i32
    return %c0_i32, %c0_i32_0 : i32, i32
  }
  func.func @transform_1(%arg0: i32) -> (i32, i32) {
    %c0_i32 = arith.constant 0 : i32
    %c0_i32_0 = arith.constant 0 : i32
    %c0_i32_1 = arith.constant 0 : i32
    return %c0_i32, %c0_i32_0 : i32, i32
  }
  func.func @transform_2(%arg0: i32) -> (i32, i32, i32) {
    %c0_i32 = arith.constant 0 : i32
    %c0_i32_0 = arith.constant 0 : i32
    %c0_i32_1 = arith.constant 0 : i32
    return %arg0, %c0_i32, %c0_i32_0 : i32, i32, i32
  }
  func.func @transform_3(%arg0: i32) -> (i32, i32) {
    %c0_i32 = arith.constant 0 : i32
    %c0_i32_0 = arith.constant 0 : i32
    return %arg0, %c0_i32 : i32, i32
  }
}

</mosaic_0001>

<bundles_post_ra>
// kernel: tpu_custom_call.1
= control target key start
LH: loop header
LB: loop body
LE: loop exit
PB: predicated region body
PF: predicated region fallthrough
CT: control target
= control target key end

     0   :  { %8 = vsyncpa [#allocation3], 0  ;;  %s611_s0 = inlined_call_operand.hbm [shape: f32[256,256], index: 0, kind: input, shape index: {}]   ;;  %s612_s1 = inlined_call_operand.hbm [shape: f32[256,256], index: 1, kind: input, shape index: {}]   ;;  %s613_s2 = inlined_call_operand.hbm [shape: f32[2,4,256], index: 2, kind: input, shape index: {}]   ;;  %s614_s3 = inlined_call_operand.hbm [shape: f32[2,256], index: 3, kind: output, shape index: {}]  }
   0x1   :  { %9 = vsyncpa [#allocation6], 0 }
   0x2   :  { %10 = vsyncpa [#allocation4], 0  ;;  %s559_s12 = smov [#allocation5]   ;;  %s560_s14 = smov [#allocation2]  }
   0x3   :  { %s28_s13 = sshll.u32 %s559_s12, 4  ;;  %s16_s15 = sshll.u32 %s560_s14, 4  ;;  %s29_s13 = int_to_ptr.vmem [resolvable:$true] %s28_s13  ;;  %s17_s15 = int_to_ptr.vmem [resolvable:$true] %s16_s15 }
   0x4   :  { %s481_s16 = scalar_lea.vmem %s29_s13, 8192  ;;  %p486_p1 = scmp.lt.s32.totalorder %s29_s13, %s29_s13 }
   0x5   :  { %p482_p0 = scmp.ne.s32.totalorder %s29_s13, %s481_s16  ;;  %p487_p2 = scmp.lt.s32.totalorder %s481_s16, %s481_s16 }
   0x7   :  { %p488_p3 = por %p487_p2, %p486_p1 }
   0x9   :  { %p489_p4 = pnand %p488_p3, %p482_p0 }
   0xb   :  { %492 = shalt.err (!%p489_p4)
}
   0xc   :  { %s561_s17 = smov 256   ;;  %s562_s18 = smov 16  }
   0xd   :  { %34 = dma.hbm_to_vmem [thread:$0]  %s612_s1, 8192, %s29_s13, [#allocation6], %s561_s17, %s561_s17, %s562_s18  }
   0xe   :  { %s501_s21 = scalar_lea.vmem %s17_s15, 8192  ;;  %p506_p6 = scmp.lt.s32.totalorder %s17_s15, %s17_s15 }
   0xf   :  { %p502_p5 = scmp.ne.s32.totalorder %s17_s15, %s501_s21  ;;  %p507_p7 = scmp.lt.s32.totalorder %s501_s21, %s501_s21 }
  0x11   :  { %p508_p8 = por %p507_p7, %p506_p6 }
  0x13   :  { %p509_p9 = pnand %p508_p8, %p502_p5 }
  0x15   :  { %512 = shalt.err (!%p509_p9)
}
  0x16   :  { %22 = dma.hbm_to_vmem [thread:$0]  %s611_s0, 8192, %s17_s15, [#allocation3], %s561_s17, %s561_s17, %s562_s18  }
  0x17   :  { %s563_s24 = smov [#allocation7]  }
  0x18   :  { %s40_s25 = sshll.u32 %s563_s24, 4  ;;  %s41_s25 = int_to_ptr.vmem [resolvable:$true] %s40_s25 }
  0x19   :  { %s521_s26 = scalar_lea.vmem %s41_s25, 256  ;;  %p526_p11 = scmp.lt.s32.totalorder %s41_s25, %s41_s25 }
  0x1a   :  { %p522_p10 = scmp.ne.s32.totalorder %s41_s25, %s521_s26  ;;  %p527_p12 = scmp.lt.s32.totalorder %s521_s26, %s521_s26 }
  0x1c   :  { %p528_p13 = por %p527_p12, %p526_p11 }
  0x1e   :  { %p529_p0 = pnand %p528_p13, %p522_p10 }
  0x20   :  { %532 = shalt.err (!%p529_p0)
}
  0x21   :  { %s564_s1 = smov 128   ;;  %s565_s27 = smov 8  }
  0x22   :  { %46 = dma.hbm_to_vmem [thread:$0]  %s613_s2, 256, %s41_s25, [#allocation6], %s564_s1, %s564_s1, %s565_s27  }
  0x23   :  { %553 = dma.done.wait [#allocation3], 8192  }
  0x24   :  { %554 = vsyncadd [#allocation3], 4294959104 }
  0x25   :  { %555 = dma.done.wait [#allocation6], 8448  }
  0x26   :  { %556 = vsyncadd [#allocation6], 4294958848  ;;  %v220_v0 = vld [vmem:[#allocation5 + $0xf8] sm:$0xff]  ;;  %v219_v2 = vld [vmem:[#allocation5 + $0xf0] sm:$0xff]  ;;  %vm64_vm0 = vcmask 1043456   ;;  %vm257_vm1 = vcmask 1041409  }
  0x27   :  { %v156_v1 = vld [vmem:[#allocation2 + $0xf8] sm:$0xff]  ;;  %262 = vmatprep.subr.mxu0 %v220_v0  ;;  %v155_v3 = vld [vmem:[#allocation2 + $0xf0] sm:$0xff]  ;;  %v218_v4 = vld [vmem:[#allocation5 + $0xe8] sm:$0xff]  ;;  %s566_s0 = smov [#allocation8]  }
  0x28   :  { %341 = vmatprep.subr.mxu1 %v156_v1  ;;  %v154_v5 = vld [vmem:[#allocation2 + $0xe8] sm:$0xff]  ;;  %263 = vmatpush1.msra.mxu0 %v219_v2  ;;  %v217_v6 = vld [vmem:[#allocation5 + $0xe0] sm:$0xff]  ;;  %v216_v8 = vld [vmem:[#allocation5 + $0xd8] sm:$0xff]  ;;  %s442_s2 = sshll.u32 %s566_s0, 4  ;;  %s443_s2 = int_to_ptr.vmem [resolvable:$true] %s442_s2 }
  0x29   :  { %342 = vmatpush1.msra.mxu1 %v155_v3  ;;  %v153_v7 = vld [vmem:[#allocation2 + $0xe0] sm:$0xff]  ;;  %264 = vmatprep.subr.mxu0 %v218_v4  ;;  %v152_v9 = vld [vmem:[#allocation2 + $0xd8] sm:$0xff]  ;;  %v215_v10 = vld [vmem:[#allocation5 + $0xd0] sm:$0xff]  ;;  %s533_s30 = scalar_lea.vmem %s443_s2, 64  ;;  %p538_p2 = scmp.lt.s32.totalorder %s443_s2, %s443_s2 }
  0x2a   :  { %343 = vmatprep.subr.mxu1 %v154_v5  ;;  %v151_v11 = vld [vmem:[#allocation2 + $0xd0] sm:$0xff]  ;;  %265 = vmatpush1.msra.mxu0 %v217_v6  ;;  %v214_v12 = vld [vmem:[#allocation5 + $0xc8] sm:$0xff]  ;;  %v213_v14 = vld [vmem:[#allocation5 + $0xc0] sm:$0xff]  ;;  %p534_p1 = scmp.ne.s32.totalorder %s443_s2, %s533_s30  ;;  %p539_p3 = scmp.lt.s32.totalorder %s533_s30, %s533_s30 }
  0x2b   :  { %344 = vmatpush1.msra.mxu1 %v153_v7  ;;  %v150_v13 = vld [vmem:[#allocation2 + $0xc8] sm:$0xff]  ;;  %266 = vmatprep.subr.mxu0 %v216_v8  ;;  %v149_v15 = vld [vmem:[#allocation2 + $0xc0] sm:$0xff]  ;;  %v212_v16 = vld [vmem:[#allocation5 + $0xb8] sm:$0xff] }
  0x2c   :  { %345 = vmatprep.subr.mxu1 %v152_v9  ;;  %267 = vmatpush1.msra.mxu0 %v215_v10  ;;  %v148_v17 = vld [vmem:[#allocation2 + $0xb8] sm:$0xff]  ;;  %v211_v18 = vld [vmem:[#allocation5 + $0xb0] sm:$0xff]  ;;  %v210_v20 = vld [vmem:[#allocation5 + $0xa8] sm:$0xff]  ;;  %p540_p4 = por %p539_p3, %p538_p2 }
  0x2d   :  { %346 = vmatpush1.msra.mxu1 %v151_v11  ;;  %268 = vmatprep.subr.mxu0 %v214_v12  ;;  %v147_v19 = vld [vmem:[#allocation2 + $0xb0] sm:$0xff]  ;;  %v146_v21 = vld [vmem:[#allocation2 + $0xa8] sm:$0xff]  ;;  %v209_v22 = vld [vmem:[#allocation5 + $0xa0] sm:$0xff] }
  0x2e   :  { %347 = vmatprep.subr.mxu1 %v150_v13  ;;  %269 = vmatpush1.msra.mxu0 %v213_v14  ;;  %v145_v23 = vld [vmem:[#allocation2 + $0xa0] sm:$0xff]  ;;  %v208_v24 = vld [vmem:[#allocation5 + $0x98] sm:$0xff]  ;;  %v207_v26 = vld [vmem:[#allocation5 + $0x90] sm:$0xff]  ;;  %p541_p5 = pnand %p540_p4, %p534_p1 }
  0x2f   :  { %348 = vmatpush1.msra.mxu1 %v149_v15  ;;  %270 = vmatprep.subr.mxu0 %v212_v16  ;;  %v144_v25 = vld [vmem:[#allocation2 + $0x98] sm:$0xff]  ;;  %v143_v27 = vld [vmem:[#allocation2 + $0x90] sm:$0xff]  ;;  %v206_v28 = vld [vmem:[#allocation5 + $0x88] sm:$0xff] }
  0x30   :  { %349 = vmatprep.subr.mxu1 %v148_v17  ;;  %271 = vmatpush1.msra.mxu0 %v211_v18  ;;  %v142_v29 = vld [vmem:[#allocation2 + $0x88] sm:$0xff]  ;;  %v205_v30 = vld [vmem:[#allocation5 + $0x80] sm:$0xff]  ;;  %v204_v32 = vld [vmem:[#allocation5 + $0x78] sm:$0xff] }
  0x31   :  { %350 = vmatpush1.msra.mxu1 %v147_v19  ;;  %272 = vmatprep.subr.mxu0 %v210_v20  ;;  %v141_v31 = vld [vmem:[#allocation2 + $0x80] sm:$0xff]  ;;  %v140_v33 = vld [vmem:[#allocation2 + $0x78] sm:$0xff]  ;;  %v203_v34 = vld [vmem:[#allocation5 + $0x70] sm:$0xff] }
  0x32   :  { %351 = vmatprep.subr.mxu1 %v146_v21  ;;  %273 = vmatpush1.msra.mxu0 %v209_v22  ;;  %v139_v35 = vld [vmem:[#allocation2 + $0x70] sm:$0xff]  ;;  %v202_v36 = vld [vmem:[#allocation5 + $0x68] sm:$0xff]  ;;  %v201_v38 = vld [vmem:[#allocation5 + $0x60] sm:$0xff] }
  0x33   :  { %352 = vmatpush1.msra.mxu1 %v145_v23  ;;  %274 = vmatprep.subr.mxu0 %v208_v24  ;;  %v138_v37 = vld [vmem:[#allocation2 + $0x68] sm:$0xff]  ;;  %v137_v39 = vld [vmem:[#allocation2 + $0x60] sm:$0xff]  ;;  %v200_v40 = vld [vmem:[#allocation5 + $0x58] sm:$0xff] }
  0x34   :  { %353 = vmatprep.subr.mxu1 %v144_v25  ;;  %275 = vmatpush1.msra.mxu0 %v207_v26  ;;  %v136_v41 = vld [vmem:[#allocation2 + $0x58] sm:$0xff]  ;;  %v199_v42 = vld [vmem:[#allocation5 + $0x50] sm:$0xff]  ;;  %v198_v44 = vld [vmem:[#allocation5 + $0x48] sm:$0xff] }
  0x35   :  { %354 = vmatpush1.msra.mxu1 %v143_v27  ;;  %276 = vmatprep.subr.mxu0 %v206_v28  ;;  %v135_v43 = vld [vmem:[#allocation2 + $0x50] sm:$0xff]  ;;  %v134_v45 = vld [vmem:[#allocation2 + $0x48] sm:$0xff]  ;;  %v197_v46 = vld [vmem:[#allocation5 + $0x40] sm:$0xff] }
  0x36   :  { %355 = vmatprep.subr.mxu1 %v142_v29  ;;  %277 = vmatpush1.msra.mxu0 %v205_v30  ;;  %v133_v47 = vld [vmem:[#allocation2 + $0x40] sm:$0xff]  ;;  %v196_v48 = vld [vmem:[#allocation5 + $0x38] sm:$0xff]  ;;  %v195_v50 = vld [vmem:[#allocation5 + $0x30] sm:$0xff] }
  0x37   :  { %356 = vmatpush1.msra.mxu1 %v141_v31  ;;  %278 = vmatprep.subr.mxu0 %v204_v32  ;;  %v132_v49 = vld [vmem:[#allocation2 + $0x38] sm:$0xff]  ;;  %v131_v51 = vld [vmem:[#allocation2 + $0x30] sm:$0xff]  ;;  %v194_v52 = vld [vmem:[#allocation5 + $0x28] sm:$0xff] }
  0x38   :  { %357 = vmatprep.subr.mxu1 %v140_v33  ;;  %279 = vmatpush1.msra.mxu0 %v203_v34  ;;  %v130_v53 = vld [vmem:[#allocation2 + $0x28] sm:$0xff]  ;;  %v193_v54 = vld [vmem:[#allocation5 + $0x20] sm:$0xff]  ;;  %v192_v56 = vld [vmem:[#allocation5 + $0x18] sm:$0xff] }
  0x39   :  { %358 = vmatpush1.msra.mxu1 %v139_v35  ;;  %280 = vmatprep.subr.mxu0 %v202_v36  ;;  %v129_v55 = vld [vmem:[#allocation2 + $0x20] sm:$0xff]  ;;  %v128_v57 = vld [vmem:[#allocation2 + $0x18] sm:$0xff]  ;;  %v191_v58 = vld [vmem:[#allocation5 + $0x10] sm:$0xff] }
  0x3a   :  { %359 = vmatprep.subr.mxu1 %v138_v37  ;;  %281 = vmatpush1.msra.mxu0 %v201_v38  ;;  %v127_v59 = vld [vmem:[#allocation2 + $0x10] sm:$0xff]  ;;  %v190_v60 = vld [vmem:[#allocation5 + $0x8] sm:$0xff]  ;;  %v189_v62 = vld [vmem:[#allocation5] sm:$0xff] }
  0x3b   :  { %360 = vmatpush1.msra.mxu1 %v137_v39  ;;  %282 = vmatprep.subr.mxu0 %v200_v40  ;;  %v126_v61 = vld [vmem:[#allocation2 + $0x8] sm:$0xff]  ;;  %v125_v63 = vld [vmem:[#allocation2] sm:$0xff]  ;;  %v252_v0 = vld [vmem:[#allocation5 + $0x1f8] sm:$0xff] }
  0x3c   :  { %361 = vmatprep.subr.mxu1 %v136_v41  ;;  %283 = vmatpush1.msra.mxu0 %v199_v42  ;;  %v188_v1 = vld [vmem:[#allocation2 + $0x1f8] sm:$0xff]  ;;  %v251_v2 = vld [vmem:[#allocation5 + $0x1f0] sm:$0xff]  ;;  %v250_v4 = vld [vmem:[#allocation5 + $0x1e8] sm:$0xff] }
  0x3d   :  { %362 = vmatpush1.msra.mxu1 %v135_v43  ;;  %284 = vmatprep.subr.mxu0 %v198_v44  ;;  %v187_v3 = vld [vmem:[#allocation2 + $0x1f0] sm:$0xff]  ;;  %v186_v5 = vld [vmem:[#allocation2 + $0x1e8] sm:$0xff]  ;;  %v249_v6 = vld [vmem:[#allocation5 + $0x1e0] sm:$0xff] }
  0x3e   :  { %363 = vmatprep.subr.mxu1 %v134_v45  ;;  %285 = vmatpush1.msra.mxu0 %v197_v46  ;;  %v185_v7 = vld [vmem:[#allocation2 + $0x1e0] sm:$0xff]  ;;  %v248_v8 = vld [vmem:[#allocation5 + $0x1d8] sm:$0xff]  ;;  %v247_v10 = vld [vmem:[#allocation5 + $0x1d0] sm:$0xff] }
  0x3f   :  { %364 = vmatpush1.msra.mxu1 %v133_v47  ;;  %286 = vmatprep.subr.mxu0 %v196_v48  ;;  %v184_v9 = vld [vmem:[#allocation2 + $0x1d8] sm:$0xff]  ;;  %v183_v11 = vld [vmem:[#allocation2 + $0x1d0] sm:$0xff]  ;;  %v246_v12 = vld [vmem:[#allocation5 + $0x1c8] sm:$0xff] }
  0x40   :  { %365 = vmatprep.subr.mxu1 %v132_v49  ;;  %287 = vmatpush1.msra.mxu0 %v195_v50  ;;  %v182_v13 = vld [vmem:[#allocation2 + $0x1c8] sm:$0xff]  ;;  %v245_v14 = vld [vmem:[#allocation5 + $0x1c0] sm:$0xff]  ;;  %v244_v16 = vld [vmem:[#allocation5 + $0x1b8] sm:$0xff] }
  0x41   :  { %366 = vmatpush1.msra.mxu1 %v131_v51  ;;  %288 = vmatprep.subr.mxu0 %v194_v52  ;;  %v181_v15 = vld [vmem:[#allocation2 + $0x1c0] sm:$0xff]  ;;  %v180_v17 = vld [vmem:[#allocation2 + $0x1b8] sm:$0xff]  ;;  %v243_v18 = vld [vmem:[#allocation5 + $0x1b0] sm:$0xff] }
  0x42   :  { %367 = vmatprep.subr.mxu1 %v130_v53  ;;  %289 = vmatpush1.msra.mxu0 %v193_v54  ;;  %v179_v19 = vld [vmem:[#allocation2 + $0x1b0] sm:$0xff]  ;;  %v242_v20 = vld [vmem:[#allocation5 + $0x1a8] sm:$0xff]  ;;  %v241_v22 = vld [vmem:[#allocation5 + $0x1a0] sm:$0xff] }
  0x43   :  { %368 = vmatpush1.msra.mxu1 %v129_v55  ;;  %290 = vmatprep.subr.mxu0 %v192_v56  ;;  %v178_v21 = vld [vmem:[#allocation2 + $0x1a8] sm:$0xff]  ;;  %v177_v23 = vld [vmem:[#allocation2 + $0x1a0] sm:$0xff]  ;;  %v240_v24 = vld [vmem:[#allocation5 + $0x198] sm:$0xff] }
  0x44   :  { %369 = vmatprep.subr.mxu1 %v128_v57  ;;  %291 = vmatpush1.msra.mxu0 %v191_v58  ;;  %v176_v25 = vld [vmem:[#allocation2 + $0x198] sm:$0xff]  ;;  %v56_v26 = vld [vmem:[#allocation7] sm:$0xff]  ;;  %v57_v27 = vld [vmem:[#allocation7 + $0x8] sm:$0xff] }
  0x45   :  { %370 = vmatpush1.msra.mxu1 %v127_v59  ;;  %292 = vmatprep.subr.mxu0 %v190_v60  ;;  %v239_v28 = vld [vmem:[#allocation5 + $0x190] sm:$0xff]  ;;  %v60_v30 = vcombine.high %v56_v26, %v56_v26  ;;  %v61_v31 = vcombine.high %v57_v27, %v57_v27  ;;  %v93_v32 = vsel %vm64_vm0, %v56_v26, -inf  ;;  %v107_v33 = vsel %vm64_vm0, %v57_v27, -inf  ;;  %v238_v34 = vld [vmem:[#allocation5 + $0x188] sm:$0xff]  ;;  %v237_v40 = vld [vmem:[#allocation5 + $0x180] sm:$0xff] }
  0x46   :  { %371 = vmatprep.subr.mxu1 %v126_v61  ;;  %293 = vmatpush1.msra.mxu0 %v189_v62  ;;  %v175_v29 = vld [vmem:[#allocation2 + $0x190] sm:$0xff]  ;;  %v174_v35 = vld [vmem:[#allocation2 + $0x188] sm:$0xff]  ;;  %v94_v36 = vrot.slane %v93_v32, 4  ;;  %v108_v37 = vrot.slane %v107_v33, 4  ;;  %v65_v38 = vsel %vm64_vm0, %v56_v26, 0.0  ;;  %v79_v39 = vsel %vm64_vm0, %v57_v27, 0.0 }
  0x47   :  { %372 = vmatpush1.msra.mxu1 %v125_v63  ;;  %294 = vmatprep.subr.mxu0 %v252_v0  ;;  %v173_v41 = vld [vmem:[#allocation2 + $0x180] sm:$0xff]  ;;  %v100_v42 = vsel %vm64_vm0, %v60_v30, -inf  ;;  %v114_v43 = vsel %vm64_vm0, %v61_v31, -inf  ;;  %v72_v44 = vsel %vm64_vm0, %v60_v30, 0.0  ;;  %v86_v45 = vsel %vm64_vm0, %v61_v31, 0.0  ;;  %v236_v46 = vld [vmem:[#allocation5 + $0x178] sm:$0xff] }
  0x48   :  { %373 = vmatprep.subr.mxu1 %v188_v1  ;;  %295 = vmatpush2.msra.mxu0 %v251_v2  ;;  %v172_v47 = vld [vmem:[#allocation2 + $0x178] sm:$0xff]  ;;  %v101_v48 = vrot.slane %v100_v42, 4  ;;  %v115_v49 = vrot.slane %v114_v43, 4  ;;  %v73_v50 = vrot.slane %v72_v44, 4  ;;  %v87_v51 = vrot.slane %v86_v45, 4  ;;  %v235_v52 = vld [vmem:[#allocation5 + $0x170] sm:$0xff] }
  0x49   :  { %374 = vmatpush2.msra.mxu1 %v187_v3  ;;  %296 = vmatprep.subr.mxu0 %v250_v4  ;;  %v171_v53 = vld [vmem:[#allocation2 + $0x170] sm:$0xff]  ;;  %v95_v54 = vmax.f32 %v93_v32, %v94_v36  ;;  %v109_v55 = vmax.f32 %v107_v33, %v108_v37  ;;  %v66_v56 = vrot.slane %v65_v38, 4  ;;  %v80_v57 = vrot.slane %v79_v39, 4  ;;  %v234_v58 = vld [vmem:[#allocation5 + $0x168] sm:$0xff]  ;;  %v233_v63 = vld [vmem:[#allocation5 + $0x160] sm:$0xff] }
  0x4a   :  { %375 = vmatprep.subr.mxu1 %v186_v5  ;;  %297 = vmatpush2.msra.mxu0 %v249_v6  ;;  %v170_v59 = vld [vmem:[#allocation2 + $0x168] sm:$0xff]  ;;  %v102_v60 = vmax.f32 %v100_v42, %v101_v48  ;;  %v116_v61 = vmax.f32 %v114_v43, %v115_v49  ;;  %v74_v62 = vadd.f32 %v73_v50, %v72_v44  ;;  %v169_v0 = vld [vmem:[#allocation2 + $0x160] sm:$0xff]  ;;  %v232_v5 = vld [vmem:[#allocation5 + $0x158] sm:$0xff] }
  0x4b   :  { %376 = vmatpush2.msra.mxu1 %v185_v7  ;;  %298 = vmatprep.subr.mxu0 %v248_v8  ;;  %v88_v1 = vadd.f32 %v87_v51, %v86_v45  ;;  %v96_v2 = vrot.slane %v95_v54, 2  ;;  %v110_v3 = vrot.slane %v109_v55, 2  ;;  %v67_v4 = vadd.f32 %v66_v56, %v65_v38  ;;  %v168_v6 = vld [vmem:[#allocation2 + $0x158] sm:$0xff]  ;;  %v227_v33 = vld [vmem:[#allocation5 + $0x130] sm:$0xff]  ;;  %v225_v44 = vld [vmem:[#allocation5 + $0x120] sm:$0xff] }
  0x4c   :  { %377 = vmatprep.subr.mxu1 %v184_v9  ;;  %299 = vmatpush2.msra.mxu0 %v247_v10  ;;  %v103_v7 = vrot.slane %v102_v60, 2  ;;  %v117_v8 = vrot.slane %v116_v61, 2  ;;  %v75_v9 = vrot.slane %v74_v62, 2  ;;  %v81_v10 = vadd.f32 %v80_v57, %v79_v39  ;;  %v228_v27 = vld [vmem:[#allocation5 + $0x138] sm:$0xff]  ;;  %v226_v39 = vld [vmem:[#allocation5 + $0x128] sm:$0xff]  ;;  %v161_v45 = vld [vmem:[#allocation2 + $0x120] sm:$0xff] }
  0x4d   :  { %378 = vmatpush2.msra.mxu1 %v183_v11  ;;  %300 = vmatprep.subr.mxu0 %v246_v12  ;;  %v231_v11 = vld [vmem:[#allocation5 + $0x150] sm:$0xff]  ;;  %v224_v49 = vld [vmem:[#allocation5 + $0x118] sm:$0xff] }
  0x4e   :  { %379 = vmatprep.subr.mxu1 %v182_v13  ;;  %301 = vmatpush2.msra.mxu0 %v245_v14  ;;  %v167_v12 = vld [vmem:[#allocation2 + $0x150] sm:$0xff]  ;;  %v89_v13 = vrot.slane %v88_v1, 2  ;;  %v97_v14 = vmax.f32 %v95_v54, %v96_v2  ;;  %v160_v50 = vld [vmem:[#allocation2 + $0x118] sm:$0xff] }
  0x4f   :  { %380 = vmatpush2.msra.mxu1 %v181_v15  ;;  %302 = vmatprep.subr.mxu0 %v244_v16  ;;  %v111_v15 = vmax.f32 %v109_v55, %v110_v3  ;;  %v68_v16 = vrot.slane %v67_v4, 2  ;;  %v159_v54 = vld [vmem:[#allocation2 + $0x110] sm:$0xff] }
  0x50   :  { %381 = vmatprep.subr.mxu1 %v180_v17  ;;  %303 = vmatpush2.msra.mxu0 %v243_v18  ;;  %v230_v17 = vld [vmem:[#allocation5 + $0x148] sm:$0xff]  ;;  %v98_v36 = vrot.slane %v97_v14, 1 }
  0x51   :  { %382 = vmatpush2.msra.mxu1 %v179_v19  ;;  %304 = vmatprep.subr.mxu0 %v242_v20  ;;  %v166_v18 = vld [vmem:[#allocation2 + $0x148] sm:$0xff]  ;;  %v104_v19 = vmax.f32 %v102_v60, %v103_v7  ;;  %v118_v20 = vmax.f32 %v116_v61, %v117_v8  ;;  %v69_v26 = vadd.f32 %v68_v16, %v67_v4  ;;  %v112_v37 = vrot.slane %v111_v15, 1 }
  0x52   :  { %383 = vmatprep.subr.mxu1 %v178_v21  ;;  %305 = vmatpush2.msra.mxu0 %v241_v22  ;;  %v76_v21 = vadd.f32 %v75_v9, %v74_v62  ;;  %v82_v22 = vrot.slane %v81_v10, 2  ;;  %v99_v56 = vmax.f32 %v97_v14, %v98_v36  ;;  %v158_v60 = vld [vmem:[#allocation2 + $0x108] sm:$0xff]  ;;  %v221_v62 = vld [vmem:[#allocation5 + $0x100] sm:$0xff] }
  0x53   :  { %384 = vmatpush2.msra.mxu1 %v177_v23  ;;  %306 = vmatprep.subr.mxu0 %v240_v24  ;;  %v229_v23 = vld [vmem:[#allocation5 + $0x140] sm:$0xff]  ;;  %v119_v30 = vrot.slane %v118_v20, 1  ;;  %v70_v38 = vrot.slane %v69_v26, 1  ;;  %v113_v57 = vmax.f32 %v111_v15, %v112_v37 }
  0x54   :  { %385 = vmatprep.subr.mxu1 %v176_v25  ;;  %307 = vmatpush2.msra.mxu0 %v239_v28  ;;  %v165_v24 = vld [vmem:[#allocation2 + $0x140] sm:$0xff]  ;;  %v90_v25 = vadd.f32 %v89_v13, %v88_v1  ;;  %v164_v28 = vld [vmem:[#allocation2 + $0x138] sm:$0xff]  ;;  %v77_v31 = vrot.slane %v76_v21, 1  ;;  %v83_v32 = vadd.f32 %v82_v22, %v81_v10 }
  0x55   :  { %386 = vmatpush2.msra.mxu1 %v175_v29  ;;  %308 = vmatprep.subr.mxu0 %v238_v34  ;;  %v105_v29 = vrot.slane %v104_v19, 1  ;;  %v163_v34 = vld [vmem:[#allocation2 + $0x130] sm:$0xff]  ;;  %v71_v48 = vadd.f32 %v70_v38, %v69_v26  ;;  %v258_v2 = vsel %vm257_vm1, %v113_v57, %v99_v56 }
  0x56   :  { %387 = vmatprep.subr.mxu1 %v174_v35  ;;  %309 = vmatpush2.msra.mxu0 %v237_v40  ;;  %v91_v35 = vrot.slane %v90_v25, 1  ;;  %v162_v40 = vld [vmem:[#allocation2 + $0x128] sm:$0xff]  ;;  %v78_v42 = vadd.f32 %v77_v31, %v76_v21  ;;  %v84_v43 = vrot.slane %v83_v32, 1 }
  0x57   :  { %388 = vmatpush2.msra.mxu1 %v173_v41  ;;  %310 = vmatprep.subr.mxu0 %v236_v46  ;;  %v106_v41 = vmax.f32 %v104_v19, %v105_v29  ;;  %v120_v46 = vmax.f32 %v118_v20, %v119_v30 }
  0x58   :  { %389 = vmatprep.subr.mxu1 %v172_v47  ;;  %311 = vmatpush2.msra.mxu0 %v235_v52  ;;  %v92_v47 = vadd.f32 %v91_v35, %v90_v25  ;;  %v122_v51 = vmul.f32 0.25, %v78_v42  ;;  %v85_v52 = vadd.f32 %v84_v43, %v83_v32 }
  0x59   :  { %390 = vmatpush2.msra.mxu1 %v171_v53  ;;  %312 = vmatprep.subr.mxu0 %v234_v58  ;;  %v223_v53 = vld [vmem:[#allocation5 + $0x110] sm:$0xff]  ;;  %v121_v58 = vmul.f32 0.25, %v71_v48 }
  0x5a   :  { %391 = vmatprep.subr.mxu1 %v170_v59  ;;  %313 = vmatpush2.msra.mxu0 %v233_v63  ;;  %v124_v55 = vmul.f32 0.25, %v92_v47  ;;  %v222_v59 = vld [vmem:[#allocation5 + $0x108] sm:$0xff]  ;;  %v123_v61 = vmul.f32 0.25, %v85_v52  ;;  %v259_v63 = vsel %vm257_vm1, %v120_v46, %v106_v41 }
  0x5b   :  { %392 = vmatpush2.msra.mxu1 %v169_v0  ;;  %314 = vmatprep.subr.mxu0 %v232_v5  ;;  %v157_v0 = vld [vmem:[#allocation2 + $0x100] sm:$0xff] }
  0x5c   :  { %393 = vmatprep.subr.mxu1 %v168_v6  ;;  %315 = vmatpush2.msra.mxu0 %v231_v11  ;;  %v338_v1 = vsel %vm257_vm1, %v124_v55, %v122_v51  ;;  %v337_v3 = vsel %vm257_vm1, %v123_v61, %v121_v58 }
  0x5d   :  { %394 = vmatpush2.msra.mxu1 %v167_v12  ;;  %316 = vmatprep.subr.mxu0 %v230_v17 }
  0x5e   :  { %395 = vmatprep.subr.mxu1 %v166_v18  ;;  %317 = vmatpush2.msra.mxu0 %v229_v23 }
  0x5f   :  { %396 = vmatpush2.msra.mxu1 %v165_v24  ;;  %318 = vmatprep.subr.mxu0 %v228_v27 }
  0x60   :  { %397 = vmatprep.subr.mxu1 %v164_v28  ;;  %319 = vmatpush2.msra.mxu0 %v227_v33 }
  0x61   :  { %398 = vmatpush2.msra.mxu1 %v163_v34  ;;  %320 = vmatprep.subr.mxu0 %v226_v39 }
  0x62   :  { %399 = vmatprep.subr.mxu1 %v162_v40  ;;  %321 = vmatpush2.msra.mxu0 %v225_v44 }
  0x63   :  { %400 = vmatpush2.msra.mxu1 %v161_v45  ;;  %322 = vmatprep.subr.mxu0 %v224_v49 }
  0x64   :  { %401 = vmatprep.subr.mxu1 %v160_v50  ;;  %323 = vmatpush2.msra.mxu0 %v223_v53 }
  0x65   :  { %402 = vmatpush2.msra.mxu1 %v159_v54  ;;  %324 = vmatprep.subr.mxu0 %v222_v59 }
  0x66   :  { %403 = vmatprep.subr.mxu1 %v158_v60  ;;  %325 = vmatpush2.msra.mxu0 %v221_v62 }
  0x67   :  { %326 = vmatprep.mubr.f32.mxu0 %v259_v63  ;;  %404 = vmatpush2.msra.mxu1 %v157_v0 }
  0x68   :  { %405 = vmatprep.mubr.f32.mxu1 %v338_v1  ;;  %327 = vmatmul.mubr.f32.vlgmr.msra.gmra.mxu0 %v258_v2 }
  0x69   :  { %406 = vmatmul.mubr.f32.vlgmr.msra.gmra.mxu1 %v337_v3 }
 0x128   :  { %v328_v4 = vpop.f32.mrf.mxu0 }
 0x129   :  { %v407_v5 = vpop.f32.mrf.mxu1 }
 0x12a   :  { %v408_v6 = vadd.f32 %v407_v5, %v328_v4  ;;  %v330_v7 = vpop.f32.mrf.mxu0 }
 0x12b   :  { %v409_v8 = vpop.f32.mrf.mxu1 }
 0x12c   :  { %v452_v9 = vmul.f32 -1.442695, %v408_v6  ;;  %v410_v10 = vadd.f32 %v409_v8, %v330_v7 }
 0x12e   :  { %465 = vpow2.f32 %v452_v9  ;;  %v453_v11 = vmul.f32 -1.442695, %v410_v10 }
 0x130   :  { %467 = vpow2.f32 %v453_v11 }
 0x13b   :  { %v466_v12 = vpop.eup %465 }
 0x13c   :  { %v418_v13 = vadd.f32 1.0, %v466_v12 }
 0x13d   :  { %v468_v14 = vpop.eup %467 }
 0x13e   :  { %v419_v15 = vadd.f32 1.0, %v468_v14  ;;  %469 = vrcp.f32 %v418_v13 }
 0x140   :  { %471 = vrcp.f32 %v419_v15 }
 0x14b   :  { %v470_v16 = vpop.eup %469 }
 0x14d   :  { %v472_v17 = vpop.eup %471 }
 0x14e   :  { %v426_v18 = vcombine.low %v470_v16, %v472_v17 }
 0x150   :  { %454 = vst.sshfl [vmem:[#allocation8] sm:$0x33 pattern:$0x76325410] %v426_v18 }
 0x151   :  { %544 = shalt.err (!%p541_p5)
}
 0x152   :  { %445 = dma.vmem_to_hbm [thread:$0]  %s443_s2, 64, %s614_s3, [#allocation4]  }
 0x153   :  { %557 = dma.done.wait [#allocation4], 64  }
 0x154   :  { %558 = vsyncadd [#allocation4], 4294967232 }
 0x155   :  { %449 = vsyncpa [#allocation3], 1 }
 0x156   :  { %450 = vsyncpa [#allocation6], 1 }
 0x157   :  { %451 = vsyncpa [#allocation4], 1 }

</bundles_post_ra>
